<compile_context>
chip_gen: v7x
topology: tpu7x:2x2x1
jax: 0.10.0
libtpu: 0.0.40
codegen_flags: <defaults>
</compile_context>

<pallas_src>
import functools

import jax
import jax.numpy as jnp
from jax import lax
from jax.experimental import pallas as pl
from jax.experimental.pallas import tpu as pltpu


def _round_up(x, m):
    return (x + m - 1) // m * m


def _choose_tiling(M, N, out_dtype):
    """Pick (n_sub, s_sub): the padded pixel axis is n_sub*128, blocks are
    (1, 3, s_sub, 128).  Targets ~256K pixels/component per block (review #4)
    and only splits for extra parallelism when N alone cannot feed two
    TensorCores (review #5)."""
    g = 16 if jnp.dtype(out_dtype).itemsize < 4 else 8   # sublane granularity
    n_raw = pl.cdiv(M, 128)
    if n_raw <= g:
        return n_raw, n_raw                  # one tiny block == full extent
    n_g = _round_up(n_raw, g)
    t = pl.cdiv(n_g, 2048)                   # ~2048 sublanes ~= 256K px/block
    if N * t < 2 and n_g // 2 >= g:          # v7x: make sure >= 2 grid steps
        t = max(t, 2)
    s_sub = _round_up(pl.cdiv(n_g, t), g)
    n_sub = s_sub * pl.cdiv(n_g, s_sub)
    return n_sub, s_sub


def _ray_dirs_kernel(coef_ref, dirs_ref, *, resolution, shift):
    """One grid point = one (batch, pixel-tile) pair.

    coef_ref: SMEM (1, 3, 3) f32   per-batch affine coefficients
              coef[k] = [A_k, B_k, C_k] with dir_k = A_k*col + B_k*row + C_k
    dirs_ref: VMEM (1, 3, s_sub, 128)  normalized directions, component-major,
              flat pixel index p = (tile*s_sub + sublane)*128 + lane.
    """
    s_sub = dirs_ref.shape[2]
    lanes = dirs_ref.shape[3]

    # ---- flat pixel index for this tile (two iotas, no div by default) ----
    p0 = pl.program_id(1) * (s_sub * lanes)
    p = (p0
         + lax.broadcasted_iota(jnp.int32, (s_sub, lanes), 0) * lanes
         + lax.broadcasted_iota(jnp.int32, (s_sub, lanes), 1))

    if shift is not None:                      # power-of-two resolution (EG3D)
        row = p >> shift
        col = p & (resolution - 1)
    else:                                      # generic fallback (not hot)
        row = p // resolution
        col = p - row * resolution
    row_f = row.astype(jnp.float32)
    col_f = col.astype(jnp.float32)

    # ---- per-batch affine coefficients (SMEM scalar reads) ----------------
    a0 = coef_ref[0, 0, 0]; b0 = coef_ref[0, 0, 1]; c0 = coef_ref[0, 0, 2]
    a1 = coef_ref[0, 1, 0]; b1 = coef_ref[0, 1, 1]; c1 = coef_ref[0, 1, 2]
    a2 = coef_ref[0, 2, 0]; b2 = coef_ref[0, 2, 1]; c2 = coef_ref[0, 2, 2]

    dx = a0 * col_f + b0 * row_f + c0
    dy = a1 * col_f + b1 * row_f + c1
    dz = a2 * col_f + b2 * row_f + c2

    # ---- F.normalize(dim=-1, eps=1e-12): d / max(|d|, eps) ----------------
    d2 = dx * dx + dy * dy + dz * dz
    inv_norm = lax.rsqrt(jnp.maximum(d2, jnp.float32(1e-24)))   # eps**2

    odt = dirs_ref.dtype
    dirs_ref[0, 0] = (dx * inv_norm).astype(odt)
    dirs_ref[0, 1] = (dy * inv_norm).astype(odt)
    dirs_ref[0, 2] = (dz * inv_norm).astype(odt)


def _affine_coefs(rotation, intrinsics, resolution):
    """Fold intrinsics + 3x3 rotation into per-batch affine coefficients.

    dir_k(pixel) = A_k*col + B_k*row + C_k (before normalization).
    Returns (N, 3, 3) float32 with [:, k, :] = [A_k, B_k, C_k].
    """
    fx = intrinsics[:, 0, 0]
    fy = intrinsics[:, 1, 1]
    cx = intrinsics[:, 0, 2]
    cy = intrinsics[:, 1, 2]
    sk = intrinsics[:, 0, 1]
    inv_res = jnp.float32(1.0 / resolution)

    # x_lift = ax*col + bx*row + cxc ;  y_lift = by*row + cyc ;  z_cam = 1
    ax = inv_res / fx
    bx = -sk * inv_res / (fx * fy)
    cxc = (0.5 * inv_res - cx + sk * (cy - 0.5 * inv_res) / fy) / fx
    by = inv_res / fy
    cyc = (0.5 * inv_res - cy) / fy

    r0 = rotation[:, :, 0]        # (N, 3)
    r1 = rotation[:, :, 1]
    r2 = rotation[:, :, 2]
    A = r0 * ax[:, None]
    B = r0 * bx[:, None] + r1 * by[:, None]
    C = r0 * cxc[:, None] + r1 * cyc[:, None] + r2
    return jnp.stack([A, B, C], axis=-1).astype(jnp.float32)     # (N, 3, 3)


def _ray_dirs_pallas(coefs, resolution, out_dtype=jnp.float32):
    """Returns normalized ray directions, component-major (N, 3, M)."""
    resolution = int(resolution)
    N = coefs.shape[0]
    M = resolution * resolution
    n_sub, s_sub = _choose_tiling(M, N, out_dtype)
    is_pow2 = resolution >= 1 and (resolution & (resolution - 1)) == 0
    shift = resolution.bit_length() - 1 if is_pow2 else None

    kernel = functools.partial(_ray_dirs_kernel,
                               resolution=resolution, shift=shift)
    total_px = N * n_sub * 128
    itemsize = jnp.dtype(out_dtype).itemsize

    planes = pl.pallas_call(
        kernel,
        out_shape=jax.ShapeDtypeStruct((N, 3, n_sub, 128), out_dtype),
        grid_spec=pltpu.PrefetchScalarGridSpec(
            num_scalar_prefetch=0,
            grid=(N, n_sub // s_sub),
            in_specs=[
                pl.BlockSpec((1, 3, 3), lambda b, t: (b, 0, 0),
                             memory_space=pltpu.MemorySpace.SMEM),
            ],
            out_specs=pl.BlockSpec((1, 3, s_sub, 128),
                                   lambda b, t: (b, 0, t, 0)),
        ),
        compiler_params=pltpu.CompilerParams(
            dimension_semantics=("parallel", "parallel")),
        cost_estimate=pl.CostEstimate(
            flops=27 * total_px,
            transcendentals=total_px,
            bytes_accessed=3 * total_px * itemsize + N * 9 * 4),
    )(coefs)

    # Free reshape (component-major, contiguous pixel axis); slice only for
    # resolutions whose pixel count is not a multiple of the tiling.
    dirs_cm = planes.reshape(N, 3, n_sub * 128)
    if n_sub * 128 != M:
        dirs_cm = dirs_cm[:, :, :M]
    return dirs_cm


def ray_sampler_forward(cam2world_matrix, intrinsics, resolution,
                        need_cam_space=False, component_major=False,
                        out_dtype=jnp.float32):
    """Pallas implementation of RaySampler.forward.

    cam2world_matrix: (N, 4, 4), intrinsics: (N, 3, 3), resolution: int.

    need_cam_space=False -> (ray_origins (N,M,3), ray_dirs (N,M,3))
    need_cam_space=True  -> (cam_locs_cam (N,3), ray_dirs_cam (N,M,3), uv (N,M,2))

    component_major=True returns direction/origin tensors as (N, 3, M) and
    skips the final layout transpose (recommended for layout-aware consumers).
    out_dtype controls the direction dtype (bf16 halves v5e store traffic).
    """
    cam2world_matrix = cam2world_matrix.astype(jnp.float32)
    intrinsics = intrinsics.astype(jnp.float32)
    N = cam2world_matrix.shape[0]
    resolution = int(resolution)
    M = resolution * resolution

    if need_cam_space:
        # Camera-space dirs == normalize([x_lift, y_lift, 1]): same kernel
        # with an identity rotation folded into the coefficients.
        eye = jnp.broadcast_to(jnp.eye(3, dtype=jnp.float32)[None], (N, 3, 3))
        coefs = _affine_coefs(eye, intrinsics, resolution)
        dirs_cam_cm = _ray_dirs_pallas(coefs, resolution, out_dtype)
        ray_dirs_cam = (dirs_cam_cm if component_major
                        else jnp.transpose(dirs_cam_cm, (0, 2, 1)))
        cam_locs_cam = jnp.zeros((N, 3), jnp.float32)
        ii, jj = jnp.meshgrid(jnp.arange(resolution, dtype=jnp.float32),
                              jnp.arange(resolution, dtype=jnp.float32),
                              indexing="ij")
        uv = (jnp.stack([jj, ii], axis=-1).reshape(M, 2) * (1.0 / resolution)
              + 0.5 / resolution)
        uv = jnp.broadcast_to(uv[None], (N, M, 2))
        return cam_locs_cam, ray_dirs_cam, uv

    rotation = cam2world_matrix[:, :3, :3]
    coefs = _affine_coefs(rotation, intrinsics, resolution)
    dirs_cm = _ray_dirs_pallas(coefs, resolution, out_dtype)
    cam_locs_world = cam2world_matrix[:, :3, 3]

    if component_major:
        ray_origins = jnp.broadcast_to(cam_locs_world[:, :, None], (N, 3, M))
        return ray_origins, dirs_cm

    # PyTorch output convention (N, M, 3): origins are a pure broadcast, and
    # the directions pay exactly one layout transpose (see review #2 note).
    ray_dirs = jnp.transpose(dirs_cm, (0, 2, 1))
    ray_origins = jnp.broadcast_to(cam_locs_world[:, None, :], (N, M, 3))
    return ray_origins, ray_dirs


def _reference_forward(cam2world_matrix, intrinsics, resolution,
                       need_cam_space=False):
    """Plain-JAX replica of the PyTorch forward, for verification."""
    N = cam2world_matrix.shape[0]
    M = resolution ** 2
    cam_locs_world = cam2world_matrix[:, :3, 3]
    fx = intrinsics[:, 0, 0]
    fy = intrinsics[:, 1, 1]
    cx = intrinsics[:, 0, 2]
    cy = intrinsics[:, 1, 2]
    sk = intrinsics[:, 0, 1]

    ii, jj = jnp.meshgrid(jnp.arange(resolution, dtype=jnp.float32),
                          jnp.arange(resolution, dtype=jnp.float32),
                          indexing="ij")
    uv = jnp.stack([ii, jj]) * (1.0 / resolution) + 0.5 / resolution
    uv = jnp.flip(uv, 0).reshape(2, -1).T                       # (M, 2)
    uv = jnp.broadcast_to(uv[None], (N, M, 2))

    x_cam = uv[:, :, 0]
    y_cam = uv[:, :, 1]
    z_cam = jnp.ones((N, M), jnp.float32)
    x_lift = (x_cam - cx[:, None] + cy[:, None] * sk[:, None] / fy[:, None]
              - sk[:, None] * y_cam / fy[:, None]) / fx[:, None] * z_cam
    y_lift = (y_cam - cy[:, None]) / fy[:, None] * z_cam
    cam_rel = jnp.stack([x_lift, y_lift, z_cam, jnp.ones_like(z_cam)], -1)

    if need_cam_space:
        dirs_cam = cam_rel[:, :, :3]
        nrm = jnp.maximum(jnp.linalg.norm(dirs_cam, axis=2, keepdims=True), 1e-12)
        return jnp.zeros((N, 3), jnp.float32), dirs_cam / nrm, uv

    world_rel = jnp.einsum("nij,nmj->nmi", cam2world_matrix, cam_rel,
                           precision=lax.Precision.HIGHEST)[:, :, :3]
    ray_dirs = world_rel - cam_locs_world[:, None, :]
    nrm = jnp.maximum(jnp.linalg.norm(ray_dirs, axis=2, keepdims=True), 1e-12)
    ray_dirs = ray_dirs / nrm
    ray_origins = jnp.broadcast_to(cam_locs_world[:, None, :], (N, M, 3))
    return ray_origins, ray_dirs


# TODO(synk): calculate_xyz_of_depth is a separate helper (not part of
# forward) and is left untranslated.

if __name__ == "__main__":
    key = jax.random.PRNGKey(0)
    k1, k2, k3 = jax.random.split(key, 3)

    N = 2

    # Deterministic cam2world matrices: identity + small random upper block,
    # random translation, proper homogeneous last row.
    rot = jnp.eye(3)[None] + 0.1 * jax.random.normal(k1, (N, 3, 3), jnp.float32)
    trans = jax.random.normal(k2, (N, 3, 1), jnp.float32)
    top = jnp.concatenate([rot, trans], axis=2)                    # (N, 3, 4)
    bottom = jnp.broadcast_to(
        jnp.array([[0.0, 0.0, 0.0, 1.0]], jnp.float32)[None], (N, 1, 4))
    cam2world = jnp.concatenate([top, bottom], axis=1)             # (N, 4, 4)

    # Deterministic intrinsics: fx, fy ~ 1, principal point ~ 0.5, small skew.
    jitter = 0.05 * jax.random.normal(k3, (N, 5), jnp.float32)
    fx = 1.0 + jitter[:, 0]
    fy = 1.0 + jitter[:, 1]
    cx = 0.5 + jitter[:, 2]
    cy = 0.5 + jitter[:, 3]
    sk = 0.05 * jitter[:, 4]
    zeros = jnp.zeros_like(fx)
    ones = jnp.ones_like(fx)
    intrinsics = jnp.stack([
        jnp.stack([fx, sk, cx], -1),
        jnp.stack([zeros, fy, cy], -1),
        jnp.stack([zeros, zeros, ones], -1),
    ], axis=1)                                                     # (N, 3, 3)

    # ---- default path (two resolutions exercise both tiling regimes) ------
    for resolution in (16, 64):
        M = resolution ** 2
        ray_origins, ray_dirs = ray_sampler_forward(cam2world, intrinsics,
                                                    resolution)
        jax.block_until_ready((ray_origins, ray_dirs))
        ref_origins, ref_dirs = _reference_forward(cam2world, intrinsics,
                                                   resolution)
        assert ray_origins.shape == (N, M, 3)
        assert ray_dirs.shape == (N, M, 3)
        assert jnp.allclose(ray_origins, ref_origins, atol=2e-5, rtol=2e-5)
        assert jnp.allclose(ray_dirs, ref_dirs, atol=2e-5, rtol=2e-5)

    # ---- component-major fast path (skips the layout transpose) -----------
    resolution = 64
    M = resolution ** 2
    o_cm, d_cm = ray_sampler_forward(cam2world, intrinsics, resolution,
                                     component_major=True)
    jax.block_until_ready((o_cm, d_cm))
    ref_origins, ref_dirs = _reference_forward(cam2world, intrinsics, resolution)
    assert d_cm.shape == (N, 3, M) and o_cm.shape == (N, 3, M)
    assert jnp.allclose(jnp.transpose(d_cm, (0, 2, 1)), ref_dirs,
                        atol=2e-5, rtol=2e-5)
    assert jnp.allclose(jnp.transpose(o_cm, (0, 2, 1)), ref_origins, atol=1e-6)

    # ---- need_cam_space path ----------------------------------------------
    resolution = 16
    M = resolution ** 2
    cam_locs_cam, ray_dirs_cam, uv = ray_sampler_forward(
        cam2world, intrinsics, resolution, need_cam_space=True)
    jax.block_until_ready((cam_locs_cam, ray_dirs_cam, uv))
    ref_cam_locs, ref_dirs_cam, ref_uv = _reference_forward(
        cam2world, intrinsics, resolution, need_cam_space=True)
    assert cam_locs_cam.shape == (N, 3)
    assert ray_dirs_cam.shape == (N, M, 3)
    assert uv.shape == (N, M, 2)
    assert jnp.allclose(cam_locs_cam, ref_cam_locs, atol=1e-6)
    assert jnp.allclose(ray_dirs_cam, ref_dirs_cam, atol=2e-5, rtol=2e-5)
    assert jnp.allclose(uv, ref_uv, atol=1e-6, rtol=1e-6)

    # ---- bf16 output option (v5e store-traffic relief) ---------------------
    resolution = 64
    M = resolution ** 2
    _, d_bf16 = ray_sampler_forward(cam2world, intrinsics, resolution,
                                    out_dtype=jnp.bfloat16)
    jax.block_until_ready(d_bf16)
    _, ref_dirs64 = _reference_forward(cam2world, intrinsics, resolution)
    assert d_bf16.dtype == jnp.bfloat16
    assert jnp.allclose(d_bf16.astype(jnp.float32), ref_dirs64,
                        atol=1e-2, rtol=1e-2)

    print("KERNEL_OK")
</pallas_src>

<mosaic_0001>
module attributes {stable_mosaic.version = 11 : i64} {
  func.func @_ray_dirs_kernel(%arg0: i32, %arg1: i32, %arg2: memref<1x3x3xf32, #tpu.memory_space<smem>>, %arg3: memref<1x3x2x128xf32, #tpu.memory_space<vmem>>) attributes {dimension_semantics = [#tpu.dimension_semantics<parallel>, #tpu.dimension_semantics<parallel>], iteration_bounds = array<i64: 2, 1>, scalar_prefetch = 0 : i64, scratch_operands = 0 : i64, tpu.core_type = #tpu.core_type<tc>, window_params = [{transform_indices = @transform_0, window_bounds = array<i64: 1, 3, 3>}, {transform_indices = @transform_1, window_bounds = array<i64: 1, 3, 2, 128>}]} {
    %c256_i32 = arith.constant 256 : i32
    %0 = arith.muli %arg1, %c256_i32 : i32
    %1 = tpu.iota {dimensions = array<i32: 0>} : vector<2x128xi32>
    %c128_i32 = arith.constant 128 : i32
    %2 = vector.broadcast %c128_i32 : i32 to vector<2x128xi32>
    %3 = arith.muli %1, %2 : vector<2x128xi32>
    %4 = vector.broadcast %0 : i32 to vector<2x128xi32>
    %5 = arith.addi %4, %3 : vector<2x128xi32>
    %6 = tpu.iota {dimensions = array<i32: 1>} : vector<2x128xi32>
    %7 = arith.addi %5, %6 : vector<2x128xi32>
    %c4_i32 = arith.constant 4 : i32
    %8 = vector.broadcast %c4_i32 : i32 to vector<2x128xi32>
    %9 = arith.shrsi %7, %8 : vector<2x128xi32>
    %c15_i32 = arith.constant 15 : i32
    %10 = vector.broadcast %c15_i32 : i32 to vector<2x128xi32>
    %11 = arith.andi %7, %10 : vector<2x128xi32>
    %12 = arith.sitofp %9 : vector<2x128xi32> to vector<2x128xf32>
    %13 = arith.sitofp %11 : vector<2x128xi32> to vector<2x128xf32>
    %c0 = arith.constant 0 : index
    %c0_0 = arith.constant 0 : index
    %c0_1 = arith.constant 0 : index
    %14 = memref.load %arg2[%c0, %c0_0, %c0_1] : memref<1x3x3xf32, #tpu.memory_space<smem>>
    %c0_2 = arith.constant 0 : index
    %c0_3 = arith.constant 0 : index
    %c1 = arith.constant 1 : index
    %15 = memref.load %arg2[%c0_2, %c0_3, %c1] : memref<1x3x3xf32, #tpu.memory_space<smem>>
    %c0_4 = arith.constant 0 : index
    %c0_5 = arith.constant 0 : index
    %c2 = arith.constant 2 : index
    %16 = memref.load %arg2[%c0_4, %c0_5, %c2] : memref<1x3x3xf32, #tpu.memory_space<smem>>
    %c0_6 = arith.constant 0 : index
    %c1_7 = arith.constant 1 : index
    %c0_8 = arith.constant 0 : index
    %17 = memref.load %arg2[%c0_6, %c1_7, %c0_8] : memref<1x3x3xf32, #tpu.memory_space<smem>>
    %c0_9 = arith.constant 0 : index
    %c1_10 = arith.constant 1 : index
    %c1_11 = arith.constant 1 : index
    %18 = memref.load %arg2[%c0_9, %c1_10, %c1_11] : memref<1x3x3xf32, #tpu.memory_space<smem>>
    %c0_12 = arith.constant 0 : index
    %c1_13 = arith.constant 1 : index
    %c2_14 = arith.constant 2 : index
    %19 = memref.load %arg2[%c0_12, %c1_13, %c2_14] : memref<1x3x3xf32, #tpu.memory_space<smem>>
    %c0_15 = arith.constant 0 : index
    %c2_16 = arith.constant 2 : index
    %c0_17 = arith.constant 0 : index
    %20 = memref.load %arg2[%c0_15, %c2_16, %c0_17] : memref<1x3x3xf32, #tpu.memory_space<smem>>
    %c0_18 = arith.constant 0 : index
    %c2_19 = arith.constant 2 : index
    %c1_20 = arith.constant 1 : index
    %21 = memref.load %arg2[%c0_18, %c2_19, %c1_20] : memref<1x3x3xf32, #tpu.memory_space<smem>>
    %c0_21 = arith.constant 0 : index
    %c2_22 = arith.constant 2 : index
    %c2_23 = arith.constant 2 : index
    %22 = memref.load %arg2[%c0_21, %c2_22, %c2_23] : memref<1x3x3xf32, #tpu.memory_space<smem>>
    %23 = vector.broadcast %14 : f32 to vector<2x128xf32>
    %24 = arith.mulf %23, %13 : vector<2x128xf32>
    %25 = vector.broadcast %15 : f32 to vector<2x128xf32>
    %26 = arith.mulf %25, %12 : vector<2x128xf32>
    %27 = arith.addf %24, %26 : vector<2x128xf32>
    %28 = vector.broadcast %16 : f32 to vector<2x128xf32>
    %29 = arith.addf %27, %28 : vector<2x128xf32>
    %30 = vector.broadcast %17 : f32 to vector<2x128xf32>
    %31 = arith.mulf %30, %13 : vector<2x128xf32>
    %32 = vector.broadcast %18 : f32 to vector<2x128xf32>
    %33 = arith.mulf %32, %12 : vector<2x128xf32>
    %34 = arith.addf %31, %33 : vector<2x128xf32>
    %35 = vector.broadcast %19 : f32 to vector<2x128xf32>
    %36 = arith.addf %34, %35 : vector<2x128xf32>
    %37 = vector.broadcast %20 : f32 to vector<2x128xf32>
    %38 = arith.mulf %37, %13 : vector<2x128xf32>
    %39 = vector.broadcast %21 : f32 to vector<2x128xf32>
    %40 = arith.mulf %39, %12 : vector<2x128xf32>
    %41 = arith.addf %38, %40 : vector<2x128xf32>
    %42 = vector.broadcast %22 : f32 to vector<2x128xf32>
    %43 = arith.addf %41, %42 : vector<2x128xf32>
    %44 = arith.mulf %29, %29 : vector<2x128xf32>
    %45 = arith.mulf %36, %36 : vector<2x128xf32>
    %46 = arith.addf %44, %45 : vector<2x128xf32>
    %47 = arith.mulf %43, %43 : vector<2x128xf32>
    %48 = arith.addf %46, %47 : vector<2x128xf32>
    %cst = arith.constant 1.000000e-24 : f32
    %49 = vector.broadcast %cst : f32 to vector<2x128xf32>
    %50 = arith.maximumf %48, %49 : vector<2x128xf32>
    %51 = math.rsqrt %50 : vector<2x128xf32>
    %52 = arith.mulf %29, %51 : vector<2x128xf32>
    %c0_24 = arith.constant 0 : index
    %c0_25 = arith.constant 0 : index
    %c0_26 = arith.constant 0 : index
    %c0_27 = arith.constant 0 : index
    %53 = vector.load %arg3[%c0_24, %c0_25, %c0_26, %c0_27] : memref<1x3x2x128xf32, #tpu.memory_space<vmem>>, vector<1x1x2x128xf32>
    %54 = vector.shape_cast %53 : vector<1x1x2x128xf32> to vector<2x128xf32>
    %55 = vector.shape_cast %52 : vector<2x128xf32> to vector<1x1x2x128xf32>
    tpu.vector_store %arg3[%c0_24, %c0_25, %c0_26, %c0_27], %55 {strides = array<i32>} : memref<1x3x2x128xf32, #tpu.memory_space<vmem>>, vector<1x1x2x128xf32>,
    %56 = arith.mulf %36, %51 : vector<2x128xf32>
    %c0_28 = arith.constant 0 : index
    %c1_29 = arith.constant 1 : index
    %c0_30 = arith.constant 0 : index
    %c0_31 = arith.constant 0 : index
    %57 = vector.load %arg3[%c0_28, %c1_29, %c0_30, %c0_31] : memref<1x3x2x128xf32, #tpu.memory_space<vmem>>, vector<1x1x2x128xf32>
    %58 = vector.shape_cast %57 : vector<1x1x2x128xf32> to vector<2x128xf32>
    %59 = vector.shape_cast %56 : vector<2x128xf32> to vector<1x1x2x128xf32>
    tpu.vector_store %arg3[%c0_28, %c1_29, %c0_30, %c0_31], %59 {strides = array<i32>} : memref<1x3x2x128xf32, #tpu.memory_space<vmem>>, vector<1x1x2x128xf32>,
    %60 = arith.mulf %43, %51 : vector<2x128xf32>
    %c0_32 = arith.constant 0 : index
    %c2_33 = arith.constant 2 : index
    %c0_34 = arith.constant 0 : index
    %c0_35 = arith.constant 0 : index
    %61 = vector.load %arg3[%c0_32, %c2_33, %c0_34, %c0_35] : memref<1x3x2x128xf32, #tpu.memory_space<vmem>>, vector<1x1x2x128xf32>
    %62 = vector.shape_cast %61 : vector<1x1x2x128xf32> to vector<2x128xf32>
    %63 = vector.shape_cast %60 : vector<2x128xf32> to vector<1x1x2x128xf32>
    tpu.vector_store %arg3[%c0_32, %c2_33, %c0_34, %c0_35], %63 {strides = array<i32>} : memref<1x3x2x128xf32, #tpu.memory_space<vmem>>, vector<1x1x2x128xf32>,
    return
  }
  func.func @transform_0(%arg0: i32, %arg1: i32) -> (i32, i32, i32) {
    %c0_i32 = arith.constant 0 : i32
    %c0_i32_0 = arith.constant 0 : i32
    %c0_i32_1 = arith.constant 0 : i32
    return %arg0, %c0_i32, %c0_i32_0 : i32, i32, i32
  }
  func.func @transform_1(%arg0: i32, %arg1: i32) -> (i32, i32, i32, i32) {
    %c0_i32 = arith.constant 0 : i32
    %c0_i32_0 = arith.constant 0 : i32
    %c0_i32_1 = arith.constant 0 : i32
    return %arg0, %c0_i32, %arg1, %c0_i32_0 : i32, i32, i32, i32
  }
}

</mosaic_0001>

<bundles_post_ra>
// kernel: tpu_custom_call.1
= control target key start
LH: loop header
LB: loop body
LE: loop exit
PB: predicated region body
PF: predicated region fallthrough
CT: control target
= control target key end

     0   :  { %6 = vsyncpa [#allocation4], 0  ;;  %s667_s0 = inlined_call_operand.vmem [shape: f32[2,3,3], index: 0, kind: input, shape index: {}]   ;;  %s668_s1 = inlined_call_operand.hbm [shape: f32[2,3,2,128], index: 1, kind: output, shape index: {}]  }
   0x1   :  { %8 = vsyncpa [#allocation4 + $0x1], 0 }
   0x2   :  { %9 = vsyncpa [#allocation3], 0 }
   0x3   :  { %11 = vsyncpa [#allocation3 + $0x1], 0  ;;  %s511_s6 = smov 0   ;;  %s513_s7 = smov 0  }
   0x4   :  { %s515_s8 = smov 0   ;;  %s517_s9 = smov 0  }
   0x5   :  { %s519_s10 = smov 0   ;;  %s521_s11 = smov 0  }
   0x6 LB: > { %s303_s12 = sadd.s32 4294967295, %s489_s11   ;;  %s304_s13 = sadd.s32 4294967294, %s489_s11   ;;  %s489_s11 = sphi %s521_s11, %s17_s11   ;;  %s485_s10 = sphi %s519_s10, %s679_s10   ;;  %s481_s9 = sphi %s517_s9, %s678_s9   ;;  %s477_s8 = sphi %s515_s8, %s677_s8   ;;  %s473_s7 = sphi %s513_s7, %s676_s7   ;;  %s469_s6 = sphi %s511_s6, %s675_s6  }
   0x7   : > { %s29_s14 = sadd.s32 1, %s485_s10  ;;  %s36_s15 = sadd.s32 1, %s477_s8 }
   0x8   : > { %p31_p0 = scmp.ge.s32.totalorder %s29_s14, 2  ;;  %p43_p1 = scmp.ne.s32.totalorder %s477_s8, %s473_s7 }
   0x9   : > { %p44_p2 = scmp.eq.s32.totalorder %s489_s11, 0  ;;  %p49_p3 = scmp.ne.s32.totalorder %s473_s7, %s469_s6 }
   0xa   : > { %s681_s14 = smov (%p31_p0, %s29_s14), 0  ;;  %p50_p5 = scmp.eq.s32.totalorder %s303_s12, 0 }
   0xb   : > { %p552_p4 = por %p44_p2, %p43_p1  ;;  %s33_s17 = ssub.s32 %s485_s10, %s681_s14 }
   0xc   : > { %p75_p6 = scmp.eq.s32.totalorder %s303_s12, 1  ;;  %p34_p7 = scmp.eq.s32.totalorder %s33_s17, 0 }
   0xd   : > { %p558_p8 = por %p50_p5, %p49_p3  ;;  %p81_p10 = scmp.eq.s32.totalorder %s304_s13, 1 }
   0xe   : > { %p562_p9 = por %p75_p6, %p43_p1  ;;  %p331_p13 = scmp.lt.s32.totalorder %s489_s11, 2 }
   0xf   : > { %s567_s20 = scalar_select %p34_p7, %s477_s8, %s36_s15  }
  0x10   : > { %p569_p11 = por %p81_p10, %p49_p3  ;;  %s101_s22 = sand.u32 1, %s477_s8  }
  0x11   : > { %s307_s23 = sshll.u32 %s101_s22, 9  ;;  %s308_s24 = sshll.u32 %s485_s10, 2 }
  0x12   : > { %s110_s27 = scalar_lea.vmem %s667_s0, %s308_s24  ;;  %p582_p0 = pnand %p331_p13, %p552_p4 }
  0x13   : > { %s112_s29 = sshll.u32 %s110_s27, 4  ;;  %p309_p1 = scmp.ge.s32.totalorder %s489_s11, 1  ;;  %s113_s29 = int_to_ptr.vmem [resolvable:$true] %s112_s29 }
  0x14   : > { %s105_s30 = scalar_lea.smem [#allocation2], %s307_s23  ;;  %s102_s2 = scalar_lea.sflag [#allocation4], %s101_s22 }
  0x15   : > { %s392_s3 = scalar_lea.vmem %s113_s29, 64  ;;  %p394_p3 = pneg %p582_p0 }
  0x16   : > { %p393_p2 = scmp.ne.s32.totalorder %s113_s29, %s392_s3  ;;  %s397_s12 = sshll.u32 %s667_s0, 4  ;;  %s398_s12 = int_to_ptr.vmem [resolvable:$false] %s397_s12 }
  0x17   : > { %s399_s13 = scalar_lea.vmem %s398_s12, 128  ;;  %p400_p4 = scmp.lt.s32.totalorder %s113_s29, %s398_s12 }
  0x18   : > { %p395_p5 = pnand %p394_p3, %p393_p2  ;;  %p401_p7 = scmp.lt.s32.totalorder %s399_s13, %s392_s3 }
  0x1a   : > { %p396_p6 = pneg %p395_p5  ;;  %p402_p10 = por %p401_p7, %p400_p4 }
  0x1c   : > { %p403_p13 = pnand %p402_p10, %p396_p6 }
  0x1e   : > { %406 = shalt.err (!%p403_p13)
}
  0x1f   : > { %326 = dma.vmem_to_smem (!%p582_p0), %s113_s29, 64, %s105_s30, %s102_s2  }
  0x20   : > { %p117_p12 = scmp.lt.s32.totalorder %s489_s11, 3 }
  0x22   : > { %p118_p2 = pnand %p309_p1, %p117_p12 }
  0x23   : > { %s598_s15 = sand.u32 (!%p118_p2), 1, %s473_s7  }
  0x24   : > { %121 = sbr.rel (%p118_p2) target bundleno = 101 (0x65), region = 24  ;;  %s310_s16 = sshll.u32 (!%p118_p2), %s598_s15, 9 }
  0x25   : > { %s124_s17 = scalar_lea.sflag (!%p118_p2), [#allocation4], %s598_s15  ;;  %s127_s22 = scalar_lea.smem (!%p118_p2), [#allocation2], %s310_s16 }
  0x2b   : > { %460 = dma.done.wait (%p558_p8), %s124_s17, 64  }
  0x2c   : > { %462 = vsyncadd (%p558_p8), %s124_s17, 4294967232 }
  0x2d   : > { %132 = sfence }
  0x2e   : > { %v148_v0 = vlaneseq  ;;  %s311_s23 = sld [smem:[#allocation2 + %s310_s16]]  ;;  %s491_s24 = smov 1  }
  0x2f   : > { %s161_s25 = sld [smem:[%s127_s22 + %s491_s24]]  ;;  %s492_s26 = smov 2  }
  0x30   : > { %v149_v1 = vshrl.u32 %v148_v0, 7  ;;  %v154_v2 = vand.u32 127, %v148_v0  ;;  %s607_s27 = sld [smem:[%s127_s22 + %s492_s26]]  ;;  %s493_s28 = smov 128  }
  0x31   : > { %s163_s29 = sld [smem:[%s127_s22 + %s493_s28]]  ;;  %s494_s30 = smov 129  }
  0x32   : > { %v150_v3 = vmul.u32 128, %v149_v1  ;;  %s164_s2 = sld [smem:[%s127_s22 + %s494_s30]]  ;;  %s495_s3 = smov 130  }
  0x33   : > { %s165_s18 = sld [smem:[%s127_s22 + %s495_s3]]  ;;  %s496_s4 = smov 256  }
  0x34   : > { %v155_v4 = vadd.s32 %v154_v2, %v150_v3  ;;  %s166_s5 = sld [smem:[%s127_s22 + %s496_s4]]  ;;  %s497_s12 = smov 257   ;;  %v169_v7 = vstv %s311_s23 }
  0x35   : > { %s167_s13 = sld [smem:[%s127_s22 + %s497_s12]]  ;;  %s498_s16 = smov 258   ;;  %v171_v8 = vstv %s161_s25 }
  0x36   : > { %v156_v5 = vshra.s32 %v155_v4, 4  ;;  %v157_v6 = vand.u32 15, %v155_v4  ;;  %s168_s17 = sld [smem:[%s127_s22 + %s498_s16]]  ;;  %v174_v17 = vstv %s607_s27  ;;  %s317_s22 = smul.u32 6, %s598_s15 }
  0x37   : > { %v176_v11 = vstv %s163_s29  ;;  %s318_s25 = smul.u32 96, %s481_s9  ;;  %s206_s30 = scalar_lea.sflag [#allocation3], %s598_s15 }
  0x38   : > { %v158_v9 = vcvt.s32.f32 %v156_v5  ;;  %v159_v10 = vcvt.s32.f32 %v157_v6  ;;  %v178_v12 = vstv %s164_s2  ;;  %s146_s23 = scalar_lea.vmem [#allocation5], %s317_s22  ;;  %s499_s9 = smov [#allocation5]  }
  0x39   : > { %v181_v18 = vstv %s165_s18  ;;  %s220_s24 = sshll.u32 %s146_s23, 4  ;;  %s617_s29 = scalar_lea.hbm %s668_s1, %s318_s25  ;;  %s612_s24 = int_to_ptr.vmem [resolvable:$true] %s220_s24 }
  0x3a   : > { %v170_v13 = vmul.f32 %v169_v7, %v159_v10  ;;  %v172_v14 = vmul.f32 %v171_v8, %v158_v9  ;;  %v177_v15 = vmul.f32 %v176_v11, %v159_v10  ;;  %v179_v16 = vmul.f32 %v178_v12, %v158_v9  ;;  %s407_s2 = scalar_lea.vmem %s612_s24, 96  ;;  %s411_s3 = sshll.u32 %s499_s9, 4  ;;  %s412_s3 = int_to_ptr.vmem [resolvable:$false] %s411_s3 }
  0x3b   : > { %v183_v19 = vstv %s166_s5  ;;  %v185_v23 = vstv %s167_s13  ;;  %p408_p8 = scmp.ne.s32.totalorder %s612_s24, %s407_s2  ;;  %s413_s18 = scalar_lea.vmem %s412_s3, 192 }
  0x3c   : > { %v173_v20 = vadd.f32 %v172_v14, %v170_v13  ;;  %v180_v21 = vadd.f32 %v179_v16, %v177_v15  ;;  %v184_v22 = vmul.f32 %v183_v19, %v159_v10  ;;  %v186_v24 = vmul.f32 %v185_v23, %v158_v9  ;;  %p414_p1 = scmp.lt.s32.totalorder %s612_s24, %s412_s3  ;;  %p415_p3 = scmp.lt.s32.totalorder %s413_s18, %s407_s2 }
  0x3d   : > { %v188_v27 = vstv %s168_s17  ;;  %p409_p12 = pnand %p408_p8, %p562_p9 }
  0x3e   : > { %v175_v25 = vadd.f32 %v174_v17, %v173_v20  ;;  %v182_v26 = vadd.f32 %v181_v18, %v180_v21  ;;  %v187_v28 = vadd.f32 %v186_v24, %v184_v22  ;;  %p416_p5 = por %p415_p3, %p414_p1 }
  0x3f   : > { %p410_p0 = pneg %p409_p12 }
  0x40   : > { %v190_v29 = vmul.f32 %v175_v25, %v175_v25  ;;  %v191_v30 = vmul.f32 %v182_v26, %v182_v26  ;;  %v189_v31 = vadd.f32 %v188_v27, %v187_v28 }
  0x41   : > { %p417_p6 = pnand %p416_p5, %p410_p0 }
  0x42   : > { %v192_v32 = vadd.f32 %v191_v30, %v190_v29  ;;  %v193_v33 = vmul.f32 %v189_v31, %v189_v31 }
  0x44   : > { %v194_v34 = vadd.f32 %v193_v33, %v192_v32 }
  0x46   : > { %v195_v35 = vmax.f32 %v194_v34, 1e-24 }
  0x48   : > { %390 = vrsqrt.f32 %v195_v35 }
  0x52   : > { %v391_v36 = vpop.eup %390 }
  0x53   : > { %v197_v37 = vmul.f32 %v391_v36, %v175_v25  ;;  %v199_v38 = vmul.f32 %v391_v36, %v182_v26  ;;  %v202_v39 = vmul.f32 %v391_v36, %v189_v31 }
  0x55   : > { %198 = vst [vmem:[%s146_s23] sm:$0x3] %v197_v37  ;;  %312 = vst [vmem:[%s146_s23 + $0x2] sm:$0x3] %v199_v38 }
  0x56   : > { %313 = vst [vmem:[%s146_s23 + $0x4] sm:$0x3] %v202_v39 }
  0x57   : > { %420 = shalt.err (!%p417_p6)
}
  0x58   : > { %s421_s4 = scalar_lea.hbm %s617_s29, 96  ;;  %s425_s13 = scalar_lea.hbm %s668_s1, 192 }
  0x59   : > { %p422_p4 = scmp.ne.s32.totalorder %s617_s29, %s421_s4  ;;  %p426_p13 = scmp.lt.u32.totalorder %s617_s29, %s668_s1 }
  0x5a   : > { %p427_p2 = scmp.lt.u32.totalorder %s425_s13, %s421_s4  ;;  %p429_p12 = scmp.lt.u32.totalorder %s421_s4, %s617_s29 }
  0x5b   : > { %p423_p7 = pnand %p422_p4, %p562_p9 }
  0x5c   : > { %p428_p8 = por %p427_p2, %p426_p13 }
  0x5d   : > { %p424_p10 = pneg %p423_p7 }
  0x5e   : > { %p430_p0 = por %p429_p12, %p428_p8 }
  0x60   : > { %p431_p1 = pnand %p430_p0, %p424_p10 }
  0x62   : > { %434 = shalt.err (!%p431_p1)
}
  0x63   : > { %s500_s22 = smov 32  }
  0x64   : > { %321 = dma.vmem_to_hbm [thread:$0]  (%p562_p9), %s612_s24, 96, %s617_s29, %s206_s30, %s500_s22, %s500_s22, %s492_s26  }
  0x65 PF: > { %s235_s23 = sand.u32 1, %s469_s6   ;;  %p674_p3 = scmp.ge.s32.totalorder %s489_s11, 2 }
  0x66   : > { %s236_s25 = scalar_lea.sflag [#allocation3], %s235_s23 }
  0x67   : > { %p328_p5 = pnand %p674_p3, %p569_p11 }
  0x69   : > { %464 = dma.done.wait (!%p328_p5), %s236_s25, 96  }
  0x6a   : > { %466 = vsyncadd (!%p328_p5), %s236_s25, 4294967200  ;;  %s17_s11 = sadd.s32 1, %s489_s11   ;;  %s675_s6 = smov %s473_s7 }
  0x6b   : > { %p14_p6 = scmp.ge.s32.totalorder %s17_s11, 4   ;;  %s676_s7 = smov %s477_s8 }
  0x6c   : > { %s677_s8 = smov %s567_s20  ;;  %s678_s9 = smov %s485_s10 }
  0x6d   : > { %s679_s10 = smov %s681_s14  ;;  %16 = sbr.rel (!%p14_p6) target bundleno = 6 (0x6), region = 71 }
  0x74   :  { %241 = vsyncpa [#allocation3], 1 }
  0x75   :  { %243 = vsyncpa [#allocation3 + $0x1], 1 }
  0x76   :  { %244 = vsyncpa [#allocation4], 1 }
  0x77   :  { %246 = vsyncpa [#allocation4 + $0x1], 1 }

</bundles_post_ra>
